<compile_context>
chip_gen: v7x
topology: tpu7x:2x2x1
jax: 0.10.0
libtpu: 0.0.40
codegen_flags: <defaults>
</compile_context>

<pallas_src>
import functools

import jax
import jax.numpy as jnp
from jax.experimental import pallas as pl
from jax.experimental.pallas import tpu as pltpu

_LANE = 128


def _cdiv(a, b):
    return -(-a // b)


def _round_up(a, b):
    return _cdiv(a, b) * b


def _tpu_info():
    try:
        return pltpu.get_tpu_info()
    except Exception:
        return None


def _vmem_capacity_bytes():
    info = _tpu_info()
    if info is not None:
        v = getattr(info, "vmem_capacity_bytes", None)
        if isinstance(v, int) and v > 0:
            return v
    return 64 * 1024 * 1024  # conservative default (v7x-sized VMEM)


def _num_tensorcores():
    info = _tpu_info()
    if info is not None:
        for attr in ("num_cores", "num_tensorcores", "tensorcores_per_chip",
                     "cores_per_chip", "core_count"):
            v = getattr(info, attr, None)
            if isinstance(v, int) and 0 < v <= 8:
                return v
    try:
        kind = jax.devices()[0].device_kind.lower()
        if ("v4" in kind) or ("v5p" in kind) or ("7x" in kind) or ("v7" in kind):
            return 2  # megacore / dual-TensorCore parts
    except Exception:
        pass
    return 1


def _jaccard_partial_kernel(yp_ref, y_ref, inter_ref, s_ref, inter_acc, s_acc,
                            *, kpc, blk_extent, valid_extent, need_mask):
    """One grid step: accumulate sum(sigmoid(x)*t) and sum(sigmoid(x)+t).

    The block's reduction axis is axis 1 (rows for the (B, TM, 128) layout,
    lanes for the flat (B, BLK) layout).  Accumulators are VMEM-resident and
    the HBM output block is written exactly once per chunk (last k step).
    """
    c = pl.program_id(0)
    k = pl.program_id(1)

    @pl.when(k == 0)
    def _init():
        inter_acc[...] = jnp.zeros_like(inter_acc)
        s_acc[...] = jnp.zeros_like(s_acc)

    p = jax.nn.sigmoid(yp_ref[...].astype(jnp.float32))
    t = y_ref[...].astype(jnp.float32)
    inter = p * t
    s = p + t  # union = s - inter (+ eps); folded into the wrapper epilogue

    def _accumulate(inter_v, s_v):
        inter_acc[...] += jnp.sum(inter_v, axis=1, keepdims=True)
        s_acc[...] += jnp.sum(s_v, axis=1, keepdims=True)

    if need_mask:
        # Remaining valid extent along axis 1 for this step (can be <= 0 for
        # the fully-padded trailing blocks of the last chunk, whose block
        # index is clamped in the index_map).
        rem = valid_extent - (c * kpc + k) * blk_extent

        @pl.when(rem >= blk_extent)
        def _full():
            _accumulate(inter, s)

        @pl.when(rem < blk_extent)
        def _tail():
            idx = jax.lax.broadcasted_iota(jnp.int32, inter.shape, 1)
            m = idx < rem
            _accumulate(jnp.where(m, inter, 0.0), jnp.where(m, s, 0.0))
    else:
        _accumulate(inter, s)

    @pl.when(k == kpc - 1)
    def _store():
        inter_ref[0] = inter_acc[...]
        s_ref[0] = s_acc[...]


@functools.partial(jax.jit, static_argnames=("reduction", "target_block_bytes"))
def binary_jaccard_with_logits_loss(y_pred, y, reduction="mean",
                                    target_block_bytes=None):
    assert reduction in ("mean", "sum")
    b = y_pred.shape[0]
    yp = y_pred.reshape(b, -1)
    yt = y.reshape(b, -1)
    n = yp.shape[1]

    # ---- generation-aware tiling budget ------------------------------------
    vmem_cap = _vmem_capacity_bytes()
    if vmem_cap >= 96 * 1024 * 1024:          # v5e / v6e class (128 MiB VMEM)
        auto_block_bytes = 8 * 1024 * 1024
        vmem_limit = 96 * 1024 * 1024
    else:                                      # v7x class (64 MiB VMEM)
        auto_block_bytes = 4 * 1024 * 1024
        vmem_limit = 48 * 1024 * 1024
    block_bytes = auto_block_bytes if target_block_bytes is None else target_block_bytes
    block_bytes = min(block_bytes, auto_block_bytes)  # clamp user overrides
    num_cores = _num_tensorcores()

    # Sublane packing multiple for the narrowest input dtype (f32: 8,
    # bf16/f16: 16, int8/bool: 32).  Block element counts are sized with
    # f32 bytes so the in-kernel f32 intermediates stay inside the budget.
    min_itemsize = min(yp.dtype.itemsize, yt.dtype.itemsize)
    row_mult = max(8, 32 // max(1, min_itemsize))

    if n % _LANE == 0:
        # ---- lane-aligned path: free bitcast reshape to (B, rows, 128) -----
        rows = n // _LANE
        tm_t = max(row_mult, (block_bytes // (b * _LANE * 4)) // row_mult * row_mult)
        tm = rows if tm_t >= rows else tm_t        # never exceed the row dim
        nblk = _cdiv(rows, tm)
        n_chunks = max(1, min(num_cores, nblk))
        kpc = _cdiv(nblk, n_chunks)
        need_mask = (n_chunks * kpc * tm) != rows
        inputs = (yp.reshape(b, rows, _LANE), yt.reshape(b, rows, _LANE))
        in_block = (b, tm, _LANE)
        acc_shape = (b, 1, _LANE)
        blk_extent, valid_extent = tm, rows

        def in_index(c, k):
            return (0, jnp.minimum(c * kpc + k, nblk - 1), 0)
    else:
        # ---- ragged path: block the flat (B, N) layout, no HBM pad copy ----
        b_eff = _round_up(b, 8)  # a (B, BLK) VMEM tile pads B up to 8 sublanes
        blk_t = max(_LANE, (block_bytes // (b_eff * 4)) // _LANE * _LANE)
        blk = n if blk_t >= n else blk_t           # full dim or 128-multiple
        nblk = _cdiv(n, blk)
        n_chunks = max(1, min(num_cores, nblk))
        kpc = _cdiv(nblk, n_chunks)
        need_mask = (n_chunks * kpc * blk) != n
        inputs = (yp, yt)
        in_block = (b, blk)
        acc_shape = (b, 1)
        blk_extent, valid_extent = blk, n

        def in_index(c, k):
            return (0, jnp.minimum(c * kpc + k, nblk - 1))

    kernel = functools.partial(
        _jaccard_partial_kernel, kpc=kpc, blk_extent=blk_extent,
        valid_extent=valid_extent, need_mask=need_mask)

    out_shape = jax.ShapeDtypeStruct((n_chunks,) + acc_shape, jnp.float32)
    out_block = (1,) + acc_shape

    def out_index(c, k):
        return (c,) + (0,) * len(acc_shape)

    inter_part, s_part = pl.pallas_call(
        kernel,
        out_shape=(out_shape, out_shape),
        grid=(n_chunks, kpc),
        in_specs=[pl.BlockSpec(in_block, in_index),
                  pl.BlockSpec(in_block, in_index)],
        out_specs=[pl.BlockSpec(out_block, out_index),
                   pl.BlockSpec(out_block, out_index)],
        scratch_shapes=[pltpu.VMEM(acc_shape, jnp.float32),
                        pltpu.VMEM(acc_shape, jnp.float32)],
        compiler_params=pltpu.CompilerParams(
            dimension_semantics=("parallel", "arbitrary"),
            vmem_limit_bytes=vmem_limit),
    )(*inputs)

    # Tiny final reductions in plain JAX.
    inter = inter_part.sum(axis=0).reshape(b, -1).sum(axis=1)   # (B,)
    s_tot = s_part.sum(axis=0).reshape(b, -1).sum(axis=1)       # (B,)
    # Torch adds 1e-10 per element before summing -> fold into n * 1e-10.
    union = s_tot - inter + n * 1e-10
    if reduction == "mean":
        inter = jnp.mean(inter)
        union = jnp.mean(union)
    else:  # "sum"
        inter = jnp.sum(inter)
        union = jnp.sum(union)
    return 1.0 - inter / union


def _reference(y_pred, y, reduction="mean"):
    p = jax.nn.sigmoid(y_pred.astype(jnp.float32)).reshape(y_pred.shape[0], -1)
    t = y.astype(jnp.float32).reshape(y.shape[0], -1)
    inter = p * t
    uni = p + t - inter + 1e-10
    inter = jnp.sum(inter, axis=1)
    uni = jnp.sum(uni, axis=1)
    if reduction == "mean":
        inter, uni = jnp.mean(inter), jnp.mean(uni)
    else:
        inter, uni = jnp.sum(inter), jnp.sum(uni)
    return 1.0 - inter / uni


if __name__ == "__main__":
    key = jax.random.PRNGKey(0)

    # (shape, logits dtype, target_block_bytes).  None -> generation-aware
    # auto tiling; the 8 KiB cases force multi-step grids so both the
    # row-masked and lane-masked tail paths are exercised.
    cases = [
        ((2, 4, 16, 16), jnp.float32, None),        # N=1024, aligned, 1 block
        ((2, 3, 10, 10), jnp.float32, None),        # N=300, ragged flat path
        ((2, 16, 16, 16), jnp.float32, 8 * 1024),   # N=4096, multi-block grid
        ((2, 5, 16, 16), jnp.float32, 8 * 1024),    # N=1280, masked row tail
        ((2, 3, 10, 10), jnp.float32, 8 * 1024),    # N=300, masked flat blocks
        ((2, 4, 16, 16), jnp.bfloat16, None),       # narrow-dtype logits
    ]

    for shape, dtype, blk_bytes in cases:
        key, k1, k2 = jax.random.split(key, 3)
        y_pred = jax.random.normal(k1, shape, dtype=jnp.float32).astype(dtype)
        y = (jax.random.uniform(k2, shape) > 0.5).astype(jnp.float32)
        for reduction in ("mean", "sum"):
            out = binary_jaccard_with_logits_loss(
                y_pred, y, reduction=reduction, target_block_bytes=blk_bytes)
            out = jax.block_until_ready(out)
            ref = _reference(y_pred, y, reduction=reduction)
            assert jnp.allclose(out, ref, atol=1e-5, rtol=1e-5), (
                shape, dtype, reduction, out, ref)

    print("KERNEL_OK")
</pallas_src>

<mosaic_0001>
module attributes {stable_mosaic.version = 11 : i64} {
  func.func @_jaccard_partial_kernel(%arg0: i32, %arg1: i32, %arg2: memref<2x8x128xf32, #tpu.memory_space<vmem>>, %arg3: memref<2x8x128xf32, #tpu.memory_space<vmem>>, %arg4: memref<1x2x1x128xf32, #tpu.memory_space<vmem>>, %arg5: memref<1x2x1x128xf32, #tpu.memory_space<vmem>>, %arg6: memref<2x1x128xf32, #tpu.memory_space<vmem>>, %arg7: memref<2x1x128xf32, #tpu.memory_space<vmem>>) attributes {dimension_semantics = [#tpu.dimension_semantics<parallel>, #tpu.dimension_semantics<arbitrary>], iteration_bounds = array<i64: 1, 1>, scalar_prefetch = 0 : i64, scratch_operands = 2 : i64, tpu.core_type = #tpu.core_type<tc>, window_params = [{transform_indices = @transform_0, window_bounds = array<i64: 2, 8, 128>}, {transform_indices = @transform_1, window_bounds = array<i64: 2, 8, 128>}, {transform_indices = @transform_2, window_bounds = array<i64: 1, 2, 1, 128>}, {transform_indices = @transform_3, window_bounds = array<i64: 1, 2, 1, 128>}]} {
    %c0_i32 = arith.constant 0 : i32
    %0 = arith.cmpi eq, %arg1, %c0_i32 : i32
    %1 = arith.extui %0 : i1 to i32
    %c0_i32_0 = arith.constant 0 : i32
    %2 = arith.cmpi ne, %1, %c0_i32_0 : i32
    scf.if %2 {
      %cst_22 = arith.constant 0.000000e+00 : f32
      %25 = vector.broadcast %cst_22 : f32 to vector<2x1x128xf32>
      %c0_23 = arith.constant 0 : index
      %c0_24 = arith.constant 0 : index
      %c0_25 = arith.constant 0 : index
      %26 = vector.load %arg6[%c0_23, %c0_24, %c0_25] : memref<2x1x128xf32, #tpu.memory_space<vmem>>, vector<2x1x128xf32>
      tpu.vector_store %arg6[%c0_23, %c0_24, %c0_25], %25 {strides = array<i32>} : memref<2x1x128xf32, #tpu.memory_space<vmem>>, vector<2x1x128xf32>,
      %cst_26 = arith.constant 0.000000e+00 : f32
      %27 = vector.broadcast %cst_26 : f32 to vector<2x1x128xf32>
      %c0_27 = arith.constant 0 : index
      %c0_28 = arith.constant 0 : index
      %c0_29 = arith.constant 0 : index
      %28 = vector.load %arg7[%c0_27, %c0_28, %c0_29] : memref<2x1x128xf32, #tpu.memory_space<vmem>>, vector<2x1x128xf32>
      tpu.vector_store %arg7[%c0_27, %c0_28, %c0_29], %27 {strides = array<i32>} : memref<2x1x128xf32, #tpu.memory_space<vmem>>, vector<2x1x128xf32>,
    } else {
    }
    %c0 = arith.constant 0 : index
    %c0_1 = arith.constant 0 : index
    %c0_2 = arith.constant 0 : index
    %3 = vector.load %arg2[%c0, %c0_1, %c0_2] : memref<2x8x128xf32, #tpu.memory_space<vmem>>, vector<2x8x128xf32>
    %4 = arith.negf %3 : vector<2x8x128xf32>
    %5 = math.exp %4 : vector<2x8x128xf32>
    %cst = arith.constant 1.000000e+00 : f32
    %6 = vector.broadcast %cst : f32 to vector<2x8x128xf32>
    %7 = arith.addf %6, %5 : vector<2x8x128xf32>
    %8 = arith.divf %6, %7 : vector<2x8x128xf32>
    %c0_3 = arith.constant 0 : index
    %c0_4 = arith.constant 0 : index
    %c0_5 = arith.constant 0 : index
    %9 = vector.load %arg3[%c0_3, %c0_4, %c0_5] : memref<2x8x128xf32, #tpu.memory_space<vmem>>, vector<2x8x128xf32>
    %10 = arith.mulf %8, %9 : vector<2x8x128xf32>
    %11 = arith.addf %8, %9 : vector<2x8x128xf32>
    %c0_6 = arith.constant 0 : index
    %c0_7 = arith.constant 0 : index
    %c0_8 = arith.constant 0 : index
    %12 = vector.load %arg6[%c0_6, %c0_7, %c0_8] : memref<2x1x128xf32, #tpu.memory_space<vmem>>, vector<2x1x128xf32>
    %cst_9 = arith.constant dense<0.000000e+00> : vector<2x128xf32>
    %13 = vector.multi_reduction <add>, %10, %cst_9 [1] : vector<2x8x128xf32> to vector<2x128xf32>
    %14 = vector.shape_cast %13 : vector<2x128xf32> to vector<2x1x128xf32>
    %15 = arith.addf %12, %14 : vector<2x1x128xf32>
    %c0_10 = arith.constant 0 : index
    %c0_11 = arith.constant 0 : index
    %c0_12 = arith.constant 0 : index
    %16 = vector.load %arg6[%c0_10, %c0_11, %c0_12] : memref<2x1x128xf32, #tpu.memory_space<vmem>>, vector<2x1x128xf32>
    tpu.vector_store %arg6[%c0_10, %c0_11, %c0_12], %15 {strides = array<i32>} : memref<2x1x128xf32, #tpu.memory_space<vmem>>, vector<2x1x128xf32>,
    %c0_13 = arith.constant 0 : index
    %c0_14 = arith.constant 0 : index
    %c0_15 = arith.constant 0 : index
    %17 = vector.load %arg7[%c0_13, %c0_14, %c0_15] : memref<2x1x128xf32, #tpu.memory_space<vmem>>, vector<2x1x128xf32>
    %cst_16 = arith.constant dense<0.000000e+00> : vector<2x128xf32>
    %18 = vector.multi_reduction <add>, %11, %cst_16 [1] : vector<2x8x128xf32> to vector<2x128xf32>
    %19 = vector.shape_cast %18 : vector<2x128xf32> to vector<2x1x128xf32>
    %20 = arith.addf %17, %19 : vector<2x1x128xf32>
    %c0_17 = arith.constant 0 : index
    %c0_18 = arith.constant 0 : index
    %c0_19 = arith.constant 0 : index
    %21 = vector.load %arg7[%c0_17, %c0_18, %c0_19] : memref<2x1x128xf32, #tpu.memory_space<vmem>>, vector<2x1x128xf32>
    tpu.vector_store %arg7[%c0_17, %c0_18, %c0_19], %20 {strides = array<i32>} : memref<2x1x128xf32, #tpu.memory_space<vmem>>, vector<2x1x128xf32>,
    %c0_i32_20 = arith.constant 0 : i32
    %22 = arith.cmpi eq, %arg1, %c0_i32_20 : i32
    %23 = arith.extui %22 : i1 to i32
    %c0_i32_21 = arith.constant 0 : i32
    %24 = arith.cmpi ne, %23, %c0_i32_21 : i32
    scf.if %24 {
      %c0_22 = arith.constant 0 : index
      %c0_23 = arith.constant 0 : index
      %c0_24 = arith.constant 0 : index
      %25 = vector.load %arg6[%c0_22, %c0_23, %c0_24] : memref<2x1x128xf32, #tpu.memory_space<vmem>>, vector<2x1x128xf32>
      %c0_25 = arith.constant 0 : index
      %c0_26 = arith.constant 0 : index
      %c0_27 = arith.constant 0 : index
      %c0_28 = arith.constant 0 : index
      %26 = vector.load %arg4[%c0_25, %c0_26, %c0_27, %c0_28] : memref<1x2x1x128xf32, #tpu.memory_space<vmem>>, vector<1x2x1x128xf32>
      %27 = vector.shape_cast %26 : vector<1x2x1x128xf32> to vector<2x1x128xf32>
      %28 = vector.shape_cast %25 : vector<2x1x128xf32> to vector<1x2x1x128xf32>
      tpu.vector_store %arg4[%c0_25, %c0_26, %c0_27, %c0_28], %28 {strides = array<i32>} : memref<1x2x1x128xf32, #tpu.memory_space<vmem>>, vector<1x2x1x128xf32>,
      %c0_29 = arith.constant 0 : index
      %c0_30 = arith.constant 0 : index
      %c0_31 = arith.constant 0 : index
      %29 = vector.load %arg7[%c0_29, %c0_30, %c0_31] : memref<2x1x128xf32, #tpu.memory_space<vmem>>, vector<2x1x128xf32>
      %c0_32 = arith.constant 0 : index
      %c0_33 = arith.constant 0 : index
      %c0_34 = arith.constant 0 : index
      %c0_35 = arith.constant 0 : index
      %30 = vector.load %arg5[%c0_32, %c0_33, %c0_34, %c0_35] : memref<1x2x1x128xf32, #tpu.memory_space<vmem>>, vector<1x2x1x128xf32>
      %31 = vector.shape_cast %30 : vector<1x2x1x128xf32> to vector<2x1x128xf32>
      %32 = vector.shape_cast %29 : vector<2x1x128xf32> to vector<1x2x1x128xf32>
      tpu.vector_store %arg5[%c0_32, %c0_33, %c0_34, %c0_35], %32 {strides = array<i32>} : memref<1x2x1x128xf32, #tpu.memory_space<vmem>>, vector<1x2x1x128xf32>,
    } else {
    }
    return
  }
  func.func @transform_0(%arg0: i32, %arg1: i32) -> (i32, i32, i32) {
    %c1_i32 = arith.constant 1 : i32
    %0 = arith.muli %arg0, %c1_i32 : i32
    %1 = arith.addi %0, %arg1 : i32
    %c0_i32 = arith.constant 0 : i32
    %2 = arith.minsi %1, %c0_i32 : i32
    %c0_i32_0 = arith.constant 0 : i32
    %c0_i32_1 = arith.constant 0 : i32
    %c0_i32_2 = arith.constant 0 : i32
    return %c0_i32_0, %2, %c0_i32_1 : i32, i32, i32
  }
  func.func @transform_1(%arg0: i32, %arg1: i32) -> (i32, i32, i32) {
    %c1_i32 = arith.constant 1 : i32
    %0 = arith.muli %arg0, %c1_i32 : i32
    %1 = arith.addi %0, %arg1 : i32
    %c0_i32 = arith.constant 0 : i32
    %2 = arith.minsi %1, %c0_i32 : i32
    %c0_i32_0 = arith.constant 0 : i32
    %c0_i32_1 = arith.constant 0 : i32
    %c0_i32_2 = arith.constant 0 : i32
    return %c0_i32_0, %2, %c0_i32_1 : i32, i32, i32
  }
  func.func @transform_2(%arg0: i32, %arg1: i32) -> (i32, i32, i32, i32) {
    %c0_i32 = arith.constant 0 : i32
    %c0_i32_0 = arith.constant 0 : i32
    %c0_i32_1 = arith.constant 0 : i32
    %c0_i32_2 = arith.constant 0 : i32
    return %arg0, %c0_i32, %c0_i32_0, %c0_i32_1 : i32, i32, i32, i32
  }
  func.func @transform_3(%arg0: i32, %arg1: i32) -> (i32, i32, i32, i32) {
    %c0_i32 = arith.constant 0 : i32
    %c0_i32_0 = arith.constant 0 : i32
    %c0_i32_1 = arith.constant 0 : i32
    %c0_i32_2 = arith.constant 0 : i32
    return %arg0, %c0_i32, %c0_i32_0, %c0_i32_1 : i32, i32, i32, i32
  }
}

</mosaic_0001>

<bundles_post_ra>
// kernel: binary_jaccard_with_logits_loss.1
= control target key start
LH: loop header
LB: loop body
LE: loop exit
PB: predicated region body
PF: predicated region fallthrough
CT: control target
= control target key end

     0   :  { %v173_v0 = vmov 0.0   ;;  %s212_s0 = inlined_call_operand.vmem [shape: f32[2,8,128], index: 0, kind: input, shape index: {}]   ;;  %s213_s1 = inlined_call_operand.vmem [shape: f32[2,8,128], index: 1, kind: input, shape index: {}]   ;;  %s214_s2 = inlined_call_operand.vmem [shape: f32[1,2,1,128], index: 2, kind: output, shape index: {0}]   ;;  %s215_s3 = inlined_call_operand.vmem [shape: f32[1,2,1,128], index: 3, kind: output, shape index: {1}]  }
   0x1   :  { %71 = vst [vmem:[#allocation2] sm:$0x1] %v173_v0  ;;  %72 = vst [vmem:[#allocation2 + $0x1] sm:$0x1] %v173_v0  ;;  %v75_v1 = vld [vmem:[%s212_s0] sm:$0xff]  ;;  %v76_v2 = vld [vmem:[%s212_s0 + $0x8] sm:$0xff] }
   0x2   :  { %73 = vst [vmem:[#allocation3] sm:$0x1] %v173_v0  ;;  %74 = vst [vmem:[#allocation3 + $0x1] sm:$0x1] %v173_v0  ;;  %v162_v3 = vmul.f32 -1.442695, %v75_v1 }
   0x3   :  { %v163_v4 = vmul.f32 -1.442695, %v76_v2  ;;  %v89_v9 = vld [vmem:[%s213_s1] sm:$0xff]  ;;  %v90_v10 = vld [vmem:[%s213_s1 + $0x8] sm:$0xff] }
   0x4   :  { %165 = vpow2.f32 %v162_v3 }
   0x5   :  { %167 = vpow2.f32 %v163_v4 }
   0x8   :  { %v95_v35 = vld [vmem:[#allocation2] sm:$0x1]  ;;  %v96_v40 = vld [vmem:[#allocation2 + $0x1] sm:$0x1] }
   0x9   :  { %v113_v37 = vld [vmem:[#allocation3] sm:$0x1]  ;;  %v114_v42 = vld [vmem:[#allocation3 + $0x1] sm:$0x1] }
   0xe   :  { %v166_v5 = vpop.eup %165 }
   0xf   :  { %v168_v6 = vpop.eup %167  ;;  %v83_v7 = vadd.f32 1.0, %v166_v5 }
  0x10   :  { %v84_v8 = vadd.f32 1.0, %v168_v6 }
  0x11   :  { %169 = vrcp.f32 %v83_v7 }
  0x12   :  { %171 = vrcp.f32 %v84_v8 }
  0x1b   :  { %v170_v11 = vpop.eup %169 }
  0x1c   :  { %v172_v12 = vpop.eup %171  ;;  %v91_v13 = vmul.f32 %v170_v11, %v89_v9  ;;  %v93_v14 = vadd.f32 %v170_v11, %v89_v9 }
  0x1d   :  { %v92_v15 = vmul.f32 %v172_v12, %v90_v10  ;;  %v94_v16 = vadd.f32 %v172_v12, %v90_v10 }
  0x1e   :  { %v97_v17 = vrot.slane %v91_v13, 4  ;;  %v115_v18 = vrot.slane %v93_v14, 4 }
  0x1f   :  { %v103_v19 = vrot.slane %v92_v15, 4  ;;  %v121_v20 = vrot.slane %v94_v16, 4 }
  0x20   :  { %v98_v21 = vadd.f32 %v97_v17, %v91_v13  ;;  %v116_v22 = vadd.f32 %v115_v18, %v93_v14 }
  0x21   :  { %v104_v23 = vadd.f32 %v103_v19, %v92_v15  ;;  %v122_v24 = vadd.f32 %v121_v20, %v94_v16 }
  0x22   :  { %v99_v25 = vrot.slane %v98_v21, 2  ;;  %v117_v26 = vrot.slane %v116_v22, 2 }
  0x23   :  { %v105_v27 = vrot.slane %v104_v23, 2  ;;  %v123_v28 = vrot.slane %v122_v24, 2 }
  0x24   :  { %v100_v29 = vadd.f32 %v99_v25, %v98_v21  ;;  %v118_v30 = vadd.f32 %v117_v26, %v116_v22 }
  0x25   :  { %v106_v31 = vadd.f32 %v105_v27, %v104_v23  ;;  %v124_v32 = vadd.f32 %v123_v28, %v122_v24 }
  0x26   :  { %v101_v33 = vrot.slane %v100_v29, 1  ;;  %v119_v34 = vrot.slane %v118_v30, 1 }
  0x27   :  { %v107_v36 = vrot.slane %v106_v31, 1  ;;  %v125_v38 = vrot.slane %v124_v32, 1 }
  0x28   :  { %v102_v39 = vadd.f32 %v101_v33, %v100_v29  ;;  %v120_v41 = vadd.f32 %v119_v34, %v118_v30 }
  0x29   :  { %v108_v43 = vadd.f32 %v107_v36, %v106_v31  ;;  %v126_v44 = vadd.f32 %v125_v38, %v124_v32 }
  0x2a   :  { %v109_v45 = vadd.f32 %v102_v39, %v95_v35  ;;  %v127_v46 = vadd.f32 %v120_v41, %v113_v37 }
  0x2b   :  { %v110_v47 = vadd.f32 %v108_v43, %v96_v40  ;;  %v128_v48 = vadd.f32 %v126_v44, %v114_v42 }
  0x2c   :  { %111 = vst [vmem:[#allocation2] sm:$0x1] %v109_v45  ;;  %129 = vst [vmem:[#allocation3] sm:$0x1] %v127_v46 }
  0x2d   :  { %112 = vst [vmem:[#allocation2 + $0x1] sm:$0x1] %v110_v47  ;;  %130 = vst [vmem:[#allocation3 + $0x1] sm:$0x1] %v128_v48 }
  0x34   :  { %v134_v49 = vld [vmem:[#allocation2] sm:$0x3]   ;;  %v138_v50 = vld [vmem:[#allocation3] sm:$0x3]  }
  0x35   :  { %136 = vst [vmem:[%s214_s2] sm:$0x3] %v134_v49   ;;  %140 = vst [vmem:[%s215_s3] sm:$0x3] %v138_v50  }

</bundles_post_ra>
